<compile_context>
chip_gen: v5e
topology: v5e:2x2
jax: 0.10.0
libtpu: 0.0.40
codegen_flags: <defaults>
</compile_context>

<pallas_src>
import jax
import jax.numpy as jnp
from jax.experimental import pallas as pl
from jax.experimental.pallas import tpu as pltpu


def _round_up(x, m):
    return (x + m - 1) // m * m


def _vmem_capacity_bytes():
    """Physical VMEM of the local TPU (64 MiB on v7x, 128 MiB on v5e/v6e)."""
    try:
        return int(pltpu.get_tpu_info().vmem_capacity_bytes)
    except Exception:
        return 64 << 20                      # conservative fallback, safe on every gen


# --------------------------------------------------------------------------
# Generic tiled  (M, K) @ (K, N) + (1, N)  kernel.  Used for both the hoisted
# input-gate projection (phase 0) and the vocab projection (phase 2).
# --------------------------------------------------------------------------
def _matmul_bias_kernel(a_ref, w_ref, b_ref, out_ref):
    out_ref[...] = (jnp.dot(a_ref[...], w_ref[...],
                            preferred_element_type=jnp.float32)
                    + b_ref[...]).astype(out_ref.dtype)


def _matmul_bias(a, w, bias, *, out_dtype, tn_max, vmem_cap):
    """Returns (M_pad, N) = a @ w + bias.  K stays resident; M and N are tiled
    on a 2-D 'parallel' grid.  Rows beyond M are padding (caller slices)."""
    M, K = a.shape
    N = w.shape[1]

    TM = 256 if M >= 256 else _round_up(M, 8)
    M_pad = _round_up(M, TM)
    TN = min(tn_max, N)
    while N % TN:
        TN -= 128
    if M_pad != M:
        a = jnp.pad(a, ((0, M_pad - M), (0, 0)))

    blk_bytes = 2 * (TM * K * a.dtype.itemsize
                     + K * TN * w.dtype.itemsize
                     + TN * bias.dtype.itemsize
                     + TM * TN * jnp.dtype(out_dtype).itemsize)
    vmem_limit = int(min(vmem_cap // 2, max(16 << 20, 2 * blk_bytes)))

    return pl.pallas_call(
        _matmul_bias_kernel,
        out_shape=jax.ShapeDtypeStruct((M_pad, N), out_dtype),
        grid=(M_pad // TM, N // TN),
        in_specs=[
            pl.BlockSpec((TM, K), lambda i, j: (i, 0)),
            pl.BlockSpec((K, TN), lambda i, j: (0, j)),
            pl.BlockSpec((1, TN), lambda i, j: (0, j)),
        ],
        out_specs=pl.BlockSpec((TM, TN), lambda i, j: (i, j)),
        compiler_params=pltpu.CompilerParams(
            dimension_semantics=("parallel", "parallel"),
            vmem_limit_bytes=vmem_limit),
        cost_estimate=pl.CostEstimate(
            flops=2 * M_pad * K * N,
            transcendentals=0,
            bytes_accessed=(a.dtype.itemsize * M_pad * K
                            + w.dtype.itemsize * K * N
                            + bias.dtype.itemsize * N
                            + jnp.dtype(out_dtype).itemsize * M_pad * N)),
    )(a, w, bias)


# --------------------------------------------------------------------------
# Phase 1: LSTM recurrence.  Single invocation, in-kernel loop over T.
# --------------------------------------------------------------------------
def _sigmoid_from_tanh(x):
    # sigmoid(x) == 0.5 * tanh(0.5 * x) + 0.5 : one EUP pass instead of exp+recip.
    return 0.5 * jnp.tanh(0.5 * x) + 0.5


def _lstm_recurrence_kernel(xg_ref, w_hh_ref, h_seq_ref, h_scr, c_scr):
    """xg_ref: (>= T*B, 4H) f32 pre-activations (x @ W_ih + b, gate-padded);
    w_hh_ref: (H, 4H) bf16; h_seq_ref: (T, B, H) bf16; h_scr/c_scr: (B, H) f32."""
    T, B, H = h_seq_ref.shape
    h_scr[...] = jnp.zeros_like(h_scr)
    c_scr[...] = jnp.zeros_like(c_scr)

    @pl.loop(0, T)
    def _(t):
        row = pl.multiple_of(t * B, 8)                       # B is a multiple of 8
        gates = (xg_ref[pl.ds(row, B), :]                    # (B, 4H) f32
                 + jnp.dot(h_scr[...].astype(jnp.bfloat16), w_hh_ref[...],
                           preferred_element_type=jnp.float32))
        i_g = _sigmoid_from_tanh(gates[:, 0 * H:1 * H])
        f_g = _sigmoid_from_tanh(gates[:, 1 * H:2 * H])
        g_g = jnp.tanh(gates[:, 2 * H:3 * H])
        o_g = _sigmoid_from_tanh(gates[:, 3 * H:4 * H])
        c_new = f_g * c_scr[...] + i_g * g_g
        h_new = o_g * jnp.tanh(c_new)
        c_scr[...] = c_new
        h_scr[...] = h_new
        h_seq_ref[t] = h_new.astype(h_seq_ref.dtype)


def _pad_gate_cols(w, H, H_pad):
    """(..., 4H) -> (..., 4*H_pad): each gate (i,f,g,o) zero-padded to H_pad
    lanes so gate slices land on 128-lane tile boundaries."""
    pads = [(0, 0)] * (w.ndim - 1) + [(0, H_pad - H)]
    return jnp.concatenate(
        [jnp.pad(w[..., k * H:(k + 1) * H], pads) for k in range(4)], axis=-1)


def decoder_rnn_forward(features, captions, params):
    """features: (B, E) f32; captions: (B, L) int32.  Returns (B, T, V) logits,
    T = 1 + (L - 1), matching torch DecoderRNN.forward (batch_first=True)."""
    emb_table = params["embedding"]          # (V, E)
    w_ih = params["w_ih"]                    # (E, 4H)
    w_hh = params["w_hh"]                    # (H, 4H)
    b = params["b"]                          # (1, 4H)   (b_ih + b_hh)
    w_out = params["w_out"]                  # (H, V)
    b_out = params["b_out"]                  # (1, V)

    B, E = features.shape
    H = w_hh.shape[0]
    V = w_out.shape[1]

    B_pad = _round_up(B, 8)                  # sublane tile
    H_pad = _round_up(H, 128)                # lane tile -> aligned gate slices
    V_pad = _round_up(V, 128)

    vmem_cap = _vmem_capacity_bytes()
    tn_max = 1024 if vmem_cap <= (64 << 20) else 2048    # smaller V tiles on v7x

    # ---- glue: embedding gather, time-major, feature vector is step 0 -------
    embed_t = emb_table[captions[:, :-1].T]                               # (L-1, B, E)
    x = jnp.concatenate([features[None, :, :].astype(emb_table.dtype), embed_t],
                        axis=0)                                           # (T, B, E)
    T = x.shape[0]
    x = jnp.pad(x, ((0, 0), (0, B_pad - B), (0, 0))).astype(jnp.float32)

    # ---- zero-padded / pre-cast weights (padded h/c lanes stay exactly 0) ---
    w_ih_p = _pad_gate_cols(w_ih, H, H_pad).astype(jnp.bfloat16)          # (E, 4H_pad)
    w_hh_p = _pad_gate_cols(jnp.pad(w_hh, ((0, H_pad - H), (0, 0))),
                            H, H_pad).astype(jnp.bfloat16)                # (H_pad, 4H_pad)
    b_p = _pad_gate_cols(b, H, H_pad).astype(jnp.float32)                 # (1, 4H_pad)
    w_out_p = jnp.pad(w_out, ((0, H_pad - H), (0, V_pad - V))).astype(jnp.bfloat16)
    b_out_p = jnp.pad(b_out, ((0, 0), (0, V_pad - V))).astype(jnp.float32)

    # ---- phase 0: hoisted input projection, one big parallel matmul ---------
    M0 = T * B_pad
    xg = _matmul_bias(x.reshape(M0, E).astype(jnp.bfloat16), w_ih_p, b_p,
                      out_dtype=jnp.float32, tn_max=tn_max, vmem_cap=vmem_cap)
    # xg: (M0_pad, 4*H_pad) f32; rows beyond M0 are unused padding.

    # ---- phase 1: serial recurrence, single call, pl.loop over T ------------
    rec_resident = (xg.size * 4 + w_hh_p.size * 2
                    + T * B_pad * H_pad * 2 + 2 * B_pad * H_pad * 4)
    rec_limit = int(min(vmem_cap // 2, max(16 << 20, 2 * rec_resident)))
    h_seq = pl.pallas_call(
        _lstm_recurrence_kernel,
        out_shape=jax.ShapeDtypeStruct((T, B_pad, H_pad), jnp.bfloat16),
        grid=(1,),
        in_specs=[
            pl.BlockSpec(xg.shape, lambda i: (0, 0)),
            pl.BlockSpec((H_pad, 4 * H_pad), lambda i: (0, 0)),
        ],
        out_specs=pl.BlockSpec((T, B_pad, H_pad), lambda i: (0, 0, 0)),
        scratch_shapes=[pltpu.VMEM((B_pad, H_pad), jnp.float32),   # h state
                        pltpu.VMEM((B_pad, H_pad), jnp.float32)],  # c state
        compiler_params=pltpu.CompilerParams(
            dimension_semantics=("arbitrary",),                    # sequential
            vmem_limit_bytes=rec_limit),
        cost_estimate=pl.CostEstimate(
            flops=T * (2 * B_pad * H_pad * 4 * H_pad + 10 * B_pad * H_pad),
            transcendentals=5 * T * B_pad * H_pad,
            bytes_accessed=rec_resident),
    )(xg, w_hh_p)

    # ---- phase 2: vocab projection, tiled over M and V ----------------------
    # Reorder on the small H-sized bf16 tensor so the V-sized output comes out
    # directly in (B, T, V) order (no big transpose).
    M = B_pad * T
    h_bt = jnp.transpose(h_seq, (1, 0, 2)).reshape(M, H_pad)              # bf16
    logits = _matmul_bias(h_bt, w_out_p, b_out_p,
                          out_dtype=jnp.float32, tn_max=tn_max, vmem_cap=vmem_cap)
    return logits[:M].reshape(B_pad, T, V_pad)[:B, :, :V]                 # (B, T, V)


def init_params(key, embed_size, hidden_size, vocab_size):
    """Deterministic synthetic parameters (shapes follow nn.Embedding /
    nn.LSTM(num_layers=1) / nn.Linear), stored pre-transposed for the kernel."""
    ks = jax.random.split(key, 7)
    scale = 0.1
    emb = scale * jax.random.normal(ks[0], (vocab_size, embed_size), jnp.float32)
    w_ih = scale * jax.random.normal(ks[1], (embed_size, 4 * hidden_size), jnp.float32)
    w_hh = scale * jax.random.normal(ks[2], (hidden_size, 4 * hidden_size), jnp.float32)
    b_ih = scale * jax.random.normal(ks[3], (4 * hidden_size,), jnp.float32)
    b_hh = scale * jax.random.normal(ks[4], (4 * hidden_size,), jnp.float32)
    w_out = scale * jax.random.normal(ks[5], (hidden_size, vocab_size), jnp.float32)
    b_out = scale * jax.random.normal(ks[6], (vocab_size,), jnp.float32)
    # TODO(synk): project_feature_layer and nn.Softmax exist in __init__ but are
    # unused in forward(), so they are not materialized here.
    return {
        "embedding": emb,
        "w_ih": w_ih,
        "w_hh": w_hh,
        "b": (b_ih + b_hh)[None, :],
        "w_out": w_out,
        "b_out": b_out[None, :],
    }


def _decoder_rnn_reference(features, captions, params):
    """Pure-JAX f32 reference of DecoderRNN.forward for the correctness check."""
    H = params["w_hh"].shape[0]
    emb = params["embedding"][captions[:, :-1]]                    # (B, L-1, E)
    x = jnp.concatenate([features[:, None, :], emb], axis=1)       # (B, T, E)

    def step(carry, x_t):
        h, c = carry
        g = x_t @ params["w_ih"] + h @ params["w_hh"] + params["b"]
        i = jax.nn.sigmoid(g[:, 0 * H:1 * H])
        f = jax.nn.sigmoid(g[:, 1 * H:2 * H])
        gg = jnp.tanh(g[:, 2 * H:3 * H])
        o = jax.nn.sigmoid(g[:, 3 * H:4 * H])
        c = f * c + i * gg
        h = o * jnp.tanh(c)
        return (h, c), h

    B = features.shape[0]
    h0 = jnp.zeros((B, H), jnp.float32)
    _, hs = jax.lax.scan(step, (h0, h0), jnp.transpose(x, (1, 0, 2)))
    out = hs @ params["w_out"] + params["b_out"]                   # (T, B, V)
    return jnp.transpose(out, (1, 0, 2))


if __name__ == "__main__":
    embed_size = 32
    hidden_size = 32
    vocab_size = 128
    batch = 2
    cap_len = 9            # captions[:, :-1] -> 8 embedded steps, T = 9

    key = jax.random.PRNGKey(0)
    k_par, k_feat, k_cap = jax.random.split(key, 3)

    params = init_params(k_par, embed_size, hidden_size, vocab_size)
    features = jax.random.normal(k_feat, (batch, embed_size), jnp.float32)
    captions = jax.random.randint(k_cap, (batch, cap_len), 0, vocab_size,
                                  dtype=jnp.int32)

    out = decoder_rnn_forward(features, captions, params)
    jax.block_until_ready(out)
    assert out.shape == (batch, cap_len, vocab_size), out.shape

    ref = _decoder_rnn_reference(features, captions, params)
    assert bool(jnp.all(jnp.isfinite(out)))
    # bf16 MXU operands (f32 accumulate, f32 state) -> ~1e-3 worst-case error.
    assert bool(jnp.allclose(out, ref, atol=1e-2, rtol=1e-2)), \
        float(jnp.max(jnp.abs(out - ref)))
    print("KERNEL_OK")
</pallas_src>

<mosaic_0001>
module attributes {stable_mosaic.version = 11 : i64} {
  func.func @_matmul_bias_kernel(%arg0: i32, %arg1: i32, %arg2: memref<72x32xbf16, #tpu.memory_space<vmem>>, %arg3: memref<32x512xbf16, #tpu.memory_space<vmem>>, %arg4: memref<1x512xf32, #tpu.memory_space<vmem>>, %arg5: memref<72x512xf32, #tpu.memory_space<vmem>>) attributes {dimension_semantics = [#tpu.dimension_semantics<parallel>, #tpu.dimension_semantics<parallel>], iteration_bounds = array<i64: 1, 1>, scalar_prefetch = 0 : i64, scratch_operands = 0 : i64, tpu.core_type = #tpu.core_type<tc>, window_params = [{transform_indices = @transform_0, window_bounds = array<i64: 72, 32>}, {transform_indices = @transform_1, window_bounds = array<i64: 32, 512>}, {transform_indices = @transform_2, window_bounds = array<i64: 1, 512>}, {transform_indices = @transform_3, window_bounds = array<i64: 72, 512>}]} {
    %c0 = arith.constant 0 : index
    %c0_0 = arith.constant 0 : index
    %0 = vector.load %arg2[%c0, %c0_0] : memref<72x32xbf16, #tpu.memory_space<vmem>>, vector<72x32xbf16>
    %c0_1 = arith.constant 0 : index
    %c0_2 = arith.constant 0 : index
    %1 = vector.load %arg3[%c0_1, %c0_2] : memref<32x512xbf16, #tpu.memory_space<vmem>>, vector<32x512xbf16>
    %cst = arith.constant dense<0.000000e+00> : vector<72x512xf32>
    %2 = tpu.matmul %0, %1, %cst {dimension_numbers = #tpu.dot_dimension_numbers<[1], [0], [0], [1], [0, 0, 1, 1], [], []>} : vector<72x32xbf16>, vector<32x512xbf16>, vector<72x512xf32> -> vector<72x512xf32>
    %c0_3 = arith.constant 0 : index
    %c0_4 = arith.constant 0 : index
    %3 = vector.load %arg4[%c0_3, %c0_4] : memref<1x512xf32, #tpu.memory_space<vmem>>, vector<1x512xf32>
    %4 = vector.broadcast %3 : vector<1x512xf32> to vector<72x512xf32>
    %5 = arith.addf %2, %4 : vector<72x512xf32>
    %c0_5 = arith.constant 0 : index
    %c0_6 = arith.constant 0 : index
    %6 = vector.load %arg5[%c0_5, %c0_6] : memref<72x512xf32, #tpu.memory_space<vmem>>, vector<72x512xf32>
    tpu.vector_store %arg5[%c0_5, %c0_6], %5 {strides = array<i32>} : memref<72x512xf32, #tpu.memory_space<vmem>>, vector<72x512xf32>,
    return
  }
  func.func @transform_0(%arg0: i32, %arg1: i32) -> (i32, i32) {
    %c0_i32 = arith.constant 0 : i32
    %c0_i32_0 = arith.constant 0 : i32
    return %arg0, %c0_i32 : i32, i32
  }
  func.func @transform_1(%arg0: i32, %arg1: i32) -> (i32, i32) {
    %c0_i32 = arith.constant 0 : i32
    %c0_i32_0 = arith.constant 0 : i32
    return %c0_i32, %arg1 : i32, i32
  }
  func.func @transform_2(%arg0: i32, %arg1: i32) -> (i32, i32) {
    %c0_i32 = arith.constant 0 : i32
    %c0_i32_0 = arith.constant 0 : i32
    return %c0_i32, %arg1 : i32, i32
  }
  func.func @transform_3(%arg0: i32, %arg1: i32) -> (i32, i32) {
    %c0_i32 = arith.constant 0 : i32
    return %arg0, %arg1 : i32, i32
  }
}

</mosaic_0001>

<bundles_post_ra>
// kernel: tpu_custom_call.1
= control target key start
LH: loop header
LB: loop body
LE: loop exit
PB: predicated region body
PF: predicated region fallthrough
CT: control target
= control target key end

     0   :  { %8 = vsyncpa [#allocation3], 0  ;;  %s577_s0 = inlined_call_operand.vmem [shape: bf16[72,32], index: 0, kind: input, shape index: {}]   ;;  %s578_s1 = inlined_call_operand.hbm [shape: bf16[32,512], index: 1, kind: input, shape index: {}]   ;;  %s579_s2 = inlined_call_operand.vmem [shape: f32[1,512], index: 2, kind: input, shape index: {}]   ;;  %s580_s3 = inlined_call_operand.hbm [shape: f32[72,512], index: 3, kind: output, shape index: {}]  }
   0x1   :  { %9 = vsyncpa [#allocation4], 0  ;;  %s16_s14 = sshll.u32 %s578_s1, 4  ;;  %s463_s15 = smov [#allocation2]   ;;  %s17_s14 = int_to_ptr.hbm [resolvable:$true] %s16_s14 }
   0x2   :  { %s18_s16 = sshll.u32 %s463_s15, 4  ;;  %s464_s17 = smov 256   ;;  %s19_s16 = int_to_ptr.vmem [resolvable:$true] %s18_s16 }
   0x3   :  { %s465_s18 = smov 16  }
   0x4   :  { %24 = dma.hbm_to_vmem [thread:$0]  %s17_s14, 1024, %s19_s16, [#allocation3], %s464_s17, %s464_s17, %s465_s18  }
   0x5   :  { %459 = dma.done.wait [#allocation3], 1024  }
   0x6   :  { %460 = vsyncadd [#allocation3], 4294966272  ;;  %v359_v0 = vld [vmem:[#allocation2 + $0x20] sm:$0xf]  ;;  %v403_v1 = vld [vmem:[#allocation2 + $0x2c] sm:$0xf0] }
   0x7   :  { %v401_v2 = vld [vmem:[#allocation2 + $0x24] sm:$0xf]  ;;  %v360_v3 = vor.u32 %v403_v1, %v359_v0  ;;  %v361_v4 = vld [vmem:[#allocation2 + $0x30] sm:$0xf0]  ;;  %v367_v5 = vld [vmem:[#allocation2 + $0x28] sm:$0xf] }
   0x8   :  { %v404_v6 = vld [vmem:[#allocation2 + $0x34] sm:$0xf0]  ;;  %v364_v7 = vor.u32 %v401_v2, %v361_v4  ;;  %v402_v9 = vld [vmem:[#allocation2 + $0x2c] sm:$0xf]  ;;  %v369_v10 = vld [vmem:[#allocation2 + $0x38] sm:$0xf0] }
   0x9   :  { %v368_v8 = vor.u32 %v404_v6, %v367_v5  ;;  %v343_v11 = vld [vmem:[#allocation2] sm:$0xf]  ;;  %144 = vmatpush.bf16.msra.mxu0 %v360_v3  ;;  %v372_v12 = vor.u32 %v402_v9, %v369_v10  ;;  %v399_v13 = vld [vmem:[#allocation2 + $0xc] sm:$0xf0]  ;;  %v397_v14 = vld [vmem:[#allocation2 + $0x4] sm:$0xf] }
   0xa   :  { %v345_v15 = vld [vmem:[#allocation2 + $0x10] sm:$0xf0]  ;;  %177 = vmatpush.bf16.msra.mxu1 %v364_v7  ;;  %v344_v16 = vor.u32 %v399_v13, %v343_v11  ;;  %v351_v18 = vld [vmem:[#allocation2 + $0x8] sm:$0xf]  ;;  %v400_v19 = vld [vmem:[#allocation2 + $0x14] sm:$0xf0] }
   0xb   :  { %210 = vmatpush.bf16.msra.mxu2 %v368_v8  ;;  %v348_v17 = vor.u32 %v397_v14, %v345_v15  ;;  %v398_v20 = vld [vmem:[#allocation2 + $0xc] sm:$0xf]  ;;  %243 = vmatpush.bf16.msra.mxu3 %v372_v12  ;;  %v352_v21 = vor.u32 %v400_v19, %v351_v18  ;;  %v353_v22 = vld [vmem:[#allocation2 + $0x18] sm:$0xf0]  ;;  %v393_v24 = vld [vmem:[%s577_s0] sm:$0xff]  ;;  %vm122_vm0 = vcmask 261120  }
   0xc   :  { %v356_v23 = vor.u32 %v398_v20, %v353_v22  ;;  %v394_v25 = vld [vmem:[%s577_s0 + $0x8] sm:$0xff]  ;;  %v395_v26 = vld [vmem:[%s577_s0 + $0x10] sm:$0xff]  ;;  %v396_v27 = vld [vmem:[%s577_s0 + $0x18] sm:$0xff]  ;;  %s312_s5 = sshll.u32 %s580_s3, 4  ;;  %s467_s6 = smov 512   ;;  %s313_s5 = int_to_ptr.hbm [resolvable:$true] %s312_s5 }
   0xd   :  { %145 = vmatpush.bf16.msra.mxu0 %v344_v16  ;;  %v40_v28 = vld [vmem:[%s577_s0 + $0x20] sm:$0xf]  ;;  %s466_s0 = smov [#allocation5]   ;;  %s468_s7 = smov 32  }
   0xe   :  { %178 = vmatpush.bf16.msra.mxu1 %v348_v17  ;;  %v76_v29 = vunpack.c.l.b16 %v40_v28  ;;  %v49_v31 = vld [vmem:[%s579_s2] sm:$0xf]  ;;  %s310_s2 = sshll.u32 %s466_s0, 4  ;;  %s311_s2 = int_to_ptr.vmem [resolvable:$true] %s310_s2 }
   0xf   :  { %211 = vmatpush.bf16.msra.mxu2 %v352_v21  ;;  %244 = vmatpush.bf16.msra.mxu3 %v356_v23  ;;  %v530_v32 = vperm.slane %v49_v31, 0  ;;  %v532_v33 = vperm.slane %v49_v31, 1  ;;  %v536_v38 = vperm.slane %v49_v31, 2  ;;  %v538_v39 = vperm.slane %v49_v31, 3 }
  0x10   :  { %373 = vmatmul.msk.bf16.vlgmr.msra.gmra.mxu0 %vm122_vm0, %v393_v24  ;;  %v81_v30 = vpack.c.b16 %v76_v29, %v76_v29 }
  0x11   :  { %378 = vmatmul.msk.bf16.vlgmr.msra.gmra.mxu1 %vm122_vm0, %v393_v24 }
  0x12   :  { %383 = vmatmul.msk.bf16.vlgmr.msra.gmra.mxu2 %vm122_vm0, %v393_v24  ;;  %388 = vmatmul.msk.bf16.vlgmr.msra.gmra.mxu3 %vm122_vm0, %v393_v24 }
  0x20   :  { %374 = vmatmul.msk.bf16.gmra.mxu0 %vm122_vm0, %v394_v25 }
  0x21   :  { %379 = vmatmul.msk.bf16.gmra.mxu1 %vm122_vm0, %v394_v25 }
  0x22   :  { %384 = vmatmul.msk.bf16.gmra.mxu2 %vm122_vm0, %v394_v25  ;;  %389 = vmatmul.msk.bf16.gmra.mxu3 %vm122_vm0, %v394_v25 }
  0x30   :  { %375 = vmatmul.msk.bf16.gmra.mxu0 %vm122_vm0, %v395_v26 }
  0x31   :  { %380 = vmatmul.msk.bf16.gmra.mxu1 %vm122_vm0, %v395_v26 }
  0x32   :  { %385 = vmatmul.msk.bf16.gmra.mxu2 %vm122_vm0, %v395_v26  ;;  %390 = vmatmul.msk.bf16.gmra.mxu3 %vm122_vm0, %v395_v26 }
  0x40   :  { %376 = vmatmul.msk.bf16.gmra.mxu0 %vm122_vm0, %v396_v27 }
  0x41   :  { %381 = vmatmul.msk.bf16.gmra.mxu1 %vm122_vm0, %v396_v27 }
  0x42   :  { %386 = vmatmul.msk.bf16.gmra.mxu2 %vm122_vm0, %v396_v27  ;;  %391 = vmatmul.msk.bf16.gmra.mxu3 %vm122_vm0, %v396_v27 }
  0x50   :  { %377 = vmatmul.msk.bf16.gmra.mxu0 %vm122_vm0, %v81_v30 }
  0x51   :  { %382 = vmatmul.msk.bf16.gmra.mxu1 %vm122_vm0, %v81_v30 }
  0x52   :  { %387 = vmatmul.msk.bf16.gmra.mxu2 %vm122_vm0, %v81_v30  ;;  %392 = vmatmul.msk.bf16.gmra.mxu3 %vm122_vm0, %v81_v30 }
  0x8d   :  { %v147_v34 = vpop.f32.mrf.mxu0 }
  0x8e   :  { %v148_v35 = vadd.f32 %v147_v34, %v530_v32  ;;  %v180_v36 = vpop.f32.mrf.mxu1 }
  0x8f   :  { %v181_v37 = vadd.f32 %v180_v36, %v532_v33 }
  0x90   :  { %270 = vst [vmem:[#allocation5] sm:$0xff] %v148_v35 }
  0x91   :  { %271 = vst [vmem:[#allocation5 + $0x8] sm:$0xff] %v181_v37 }
  0x95   :  { %v213_v40 = vpop.f32.mrf.mxu2  ;;  %v246_v42 = vpop.f32.mrf.mxu3 }
  0x96   :  { %v214_v41 = vadd.f32 %v213_v40, %v536_v38  ;;  %v149_v43 = vpop.f32.mrf.mxu0  ;;  %v247_v44 = vadd.f32 %v246_v42, %v538_v39  ;;  %v182_v46 = vpop.f32.mrf.mxu1 }
  0x97   :  { %v150_v45 = vadd.f32 %v149_v43, %v530_v32  ;;  %v183_v47 = vadd.f32 %v182_v46, %v532_v33 }
  0x98   :  { %272 = vst [vmem:[#allocation5 + $0x10] sm:$0xff] %v214_v41 }
  0x99   :  { %273 = vst [vmem:[#allocation5 + $0x18] sm:$0xff] %v247_v44 }
  0x9a   :  { %274 = vst [vmem:[#allocation5 + $0x20] sm:$0xff] %v150_v45 }
  0x9b   :  { %275 = vst [vmem:[#allocation5 + $0x28] sm:$0xff] %v183_v47 }
  0x9d   :  { %v215_v48 = vpop.f32.mrf.mxu2  ;;  %v248_v50 = vpop.f32.mrf.mxu3 }
  0x9e   :  { %v216_v49 = vadd.f32 %v215_v48, %v536_v38  ;;  %v152_v51 = vpop.f32.mrf.mxu0  ;;  %v249_v52 = vadd.f32 %v248_v50, %v538_v39  ;;  %v185_v54 = vpop.f32.mrf.mxu1 }
  0x9f   :  { %v153_v53 = vadd.f32 %v152_v51, %v530_v32  ;;  %v186_v55 = vadd.f32 %v185_v54, %v532_v33 }
  0xa0   :  { %276 = vst [vmem:[#allocation5 + $0x30] sm:$0xff] %v216_v49 }
  0xa1   :  { %277 = vst [vmem:[#allocation5 + $0x38] sm:$0xff] %v249_v52 }
  0xa2   :  { %278 = vst [vmem:[#allocation5 + $0x40] sm:$0xff] %v153_v53 }
  0xa3   :  { %279 = vst [vmem:[#allocation5 + $0x48] sm:$0xff] %v186_v55 }
  0xa5   :  { %v218_v56 = vpop.f32.mrf.mxu2  ;;  %v251_v58 = vpop.f32.mrf.mxu3 }
  0xa6   :  { %v219_v57 = vadd.f32 %v218_v56, %v536_v38  ;;  %v154_v59 = vpop.f32.mrf.mxu0  ;;  %v252_v60 = vadd.f32 %v251_v58, %v538_v39  ;;  %v187_v62 = vpop.f32.mrf.mxu1 }
  0xa7   :  { %v155_v61 = vadd.f32 %v154_v59, %v530_v32  ;;  %v188_v63 = vadd.f32 %v187_v62, %v532_v33 }
  0xa8   :  { %280 = vst [vmem:[#allocation5 + $0x50] sm:$0xff] %v219_v57 }
  0xa9   :  { %281 = vst [vmem:[#allocation5 + $0x58] sm:$0xff] %v252_v60 }
  0xaa   :  { %282 = vst [vmem:[#allocation5 + $0x60] sm:$0xff] %v155_v61 }
  0xab   :  { %283 = vst [vmem:[#allocation5 + $0x68] sm:$0xff] %v188_v63 }
  0xad   :  { %v220_v0 = vpop.f32.mrf.mxu2  ;;  %v253_v2 = vpop.f32.mrf.mxu3 }
  0xae   :  { %v221_v1 = vadd.f32 %v220_v0, %v536_v38  ;;  %v157_v3 = vpop.f32.mrf.mxu0  ;;  %v254_v4 = vadd.f32 %v253_v2, %v538_v39  ;;  %v190_v6 = vpop.f32.mrf.mxu1 }
  0xaf   :  { %v158_v5 = vadd.f32 %v157_v3, %v530_v32  ;;  %v191_v7 = vadd.f32 %v190_v6, %v532_v33 }
  0xb0   :  { %284 = vst [vmem:[#allocation5 + $0x70] sm:$0xff] %v221_v1 }
  0xb1   :  { %285 = vst [vmem:[#allocation5 + $0x78] sm:$0xff] %v254_v4 }
  0xb2   :  { %286 = vst [vmem:[#allocation5 + $0x80] sm:$0xff] %v158_v5 }
  0xb3   :  { %287 = vst [vmem:[#allocation5 + $0x88] sm:$0xff] %v191_v7 }
  0xb5   :  { %v223_v8 = vpop.f32.mrf.mxu2  ;;  %v256_v10 = vpop.f32.mrf.mxu3 }
  0xb6   :  { %v224_v9 = vadd.f32 %v223_v8, %v536_v38  ;;  %v159_v11 = vpop.f32.mrf.mxu0  ;;  %v257_v12 = vadd.f32 %v256_v10, %v538_v39  ;;  %v192_v14 = vpop.f32.mrf.mxu1 }
  0xb7   :  { %v160_v13 = vadd.f32 %v159_v11, %v530_v32  ;;  %v193_v15 = vadd.f32 %v192_v14, %v532_v33 }
  0xb8   :  { %288 = vst [vmem:[#allocation5 + $0x90] sm:$0xff] %v224_v9 }
  0xb9   :  { %289 = vst [vmem:[#allocation5 + $0x98] sm:$0xff] %v257_v12 }
  0xba   :  { %290 = vst [vmem:[#allocation5 + $0xa0] sm:$0xff] %v160_v13 }
  0xbb   :  { %291 = vst [vmem:[#allocation5 + $0xa8] sm:$0xff] %v193_v15 }
  0xbd   :  { %v225_v16 = vpop.f32.mrf.mxu2  ;;  %v258_v18 = vpop.f32.mrf.mxu3 }
  0xbe   :  { %v226_v17 = vadd.f32 %v225_v16, %v536_v38  ;;  %v162_v19 = vpop.f32.mrf.mxu0  ;;  %v259_v20 = vadd.f32 %v258_v18, %v538_v39  ;;  %v195_v22 = vpop.f32.mrf.mxu1 }
  0xbf   :  { %v163_v21 = vadd.f32 %v162_v19, %v530_v32  ;;  %v196_v23 = vadd.f32 %v195_v22, %v532_v33 }
  0xc0   :  { %292 = vst [vmem:[#allocation5 + $0xb0] sm:$0xff] %v226_v17 }
  0xc1   :  { %293 = vst [vmem:[#allocation5 + $0xb8] sm:$0xff] %v259_v20 }
  0xc2   :  { %294 = vst [vmem:[#allocation5 + $0xc0] sm:$0xff] %v163_v21 }
  0xc3   :  { %295 = vst [vmem:[#allocation5 + $0xc8] sm:$0xff] %v196_v23 }
  0xc5   :  { %v228_v24 = vpop.f32.mrf.mxu2  ;;  %v261_v26 = vpop.f32.mrf.mxu3 }
  0xc6   :  { %v229_v25 = vadd.f32 %v228_v24, %v536_v38  ;;  %v164_v27 = vpop.f32.mrf.mxu0  ;;  %v262_v28 = vadd.f32 %v261_v26, %v538_v39  ;;  %v197_v30 = vpop.f32.mrf.mxu1 }
  0xc7   :  { %v165_v29 = vadd.f32 %v164_v27, %v530_v32  ;;  %v198_v31 = vadd.f32 %v197_v30, %v532_v33 }
  0xc8   :  { %296 = vst [vmem:[#allocation5 + $0xd0] sm:$0xff] %v229_v25 }
  0xc9   :  { %297 = vst [vmem:[#allocation5 + $0xd8] sm:$0xff] %v262_v28 }
  0xca   :  { %298 = vst [vmem:[#allocation5 + $0xe0] sm:$0xff] %v165_v29 }
  0xcb   :  { %299 = vst [vmem:[#allocation5 + $0xe8] sm:$0xff] %v198_v31 }
  0xcd   :  { %v230_v34 = vpop.f32.mrf.mxu2  ;;  %v263_v36 = vpop.f32.mrf.mxu3 }
  0xce   :  { %v231_v35 = vadd.f32 %v230_v34, %v536_v38  ;;  %v167_v37 = vpop.f32.mrf.mxu0  ;;  %v264_v40 = vadd.f32 %v263_v36, %v538_v39  ;;  %v200_v42 = vpop.f32.mrf.mxu1 }
  0xcf   :  { %v168_v41 = vadd.f32 %v167_v37, %v530_v32  ;;  %v201_v43 = vadd.f32 %v200_v42, %v532_v33 }
  0xd0   :  { %300 = vst [vmem:[#allocation5 + $0xf0] sm:$0xff] %v231_v35 }
  0xd1   :  { %301 = vst [vmem:[#allocation5 + $0xf8] sm:$0xff] %v264_v40 }
  0xd2   :  { %302 = vst [vmem:[#allocation5 + $0x100] sm:$0xff] %v168_v41 }
  0xd3   :  { %303 = vst [vmem:[#allocation5 + $0x108] sm:$0xff] %v201_v43 }
  0xd5   :  { %v233_v44 = vpop.f32.mrf.mxu2  ;;  %v266_v46 = vpop.f32.mrf.mxu3 }
  0xd6   :  { %v234_v45 = vadd.f32 %v233_v44, %v536_v38  ;;  %v169_v47 = vpop.f32.mrf.mxu0  ;;  %v267_v32 = vadd.f32 %v266_v46, %v538_v39  ;;  %v202_v48 = vpop.f32.mrf.mxu1 }
  0xd8   :  { %304 = vst [vmem:[#allocation5 + $0x110] sm:$0xff] %v234_v45 }
  0xd9   :  { %305 = vst [vmem:[#allocation5 + $0x118] sm:$0xff] %v267_v32 }
  0xda   :  { %318 = dma.vmem_to_hbm [thread:$0]  %s311_s2, 4608, %s313_s5, [#allocation4], %s467_s6, %s467_s6, %s468_s7  }
  0xdd   :  { %v235_v33 = vpop.f32.mrf.mxu2  ;;  %v268_v49 = vpop.f32.mrf.mxu3 }
  0xde   :  { %461 = dma.done.wait [#allocation4], 4608  }
  0xdf   :  { %462 = vsyncadd [#allocation4], 4294962688 }
  0xe0   :  { %323 = vsyncpa [#allocation3], 1 }
  0xe1   :  { %324 = vsyncpa [#allocation4], 1 }

</bundles_post_ra>
